<compile_context>
chip_gen: v5e
topology: v5e:2x2
jax: 0.10.0
libtpu: 0.0.40
codegen_flags: <defaults>
</compile_context>

<pallas_src>
import functools
import math

import numpy as np
import jax
import jax.numpy as jnp
from jax.experimental import pallas as pl
from jax.experimental.pallas import tpu as pltpu


def _round_up(x, m):
    return (x + m - 1) // m * m


def _cdiv(a, b):
    return -(-a // b)


def _vmem_capacity_bytes():
    try:
        info = pltpu.get_tpu_info()
        v = getattr(info, "vmem_capacity_bytes", None)
        if v:
            return int(v)
    except Exception:
        pass
    return 64 << 20  # conservative (v7x per-core VMEM)


# ----------------------------------------------------------------------------
# Constant (data-independent) bilinear geometry — separable per-axis matrices.
# ----------------------------------------------------------------------------
def _axis_combine_matrix(n_out, size_pad, ks, stride, ratio):
    """(n_out*ks, size_pad) 2-tap bilinear combine matrix for one spatial axis,
    replicating the torch code's floor/clamp/weight math exactly (coordinates
    are relative to the reflection-padded axis)."""
    rng = np.arange(-(ks - 1) // 2, (ks - 1) // 2 + 1).astype(np.float64)
    M = np.zeros((n_out * ks, size_pad), np.float64)
    for i in range(n_out):
        for r in range(ks):
            p = i * stride + ks // 2 + rng[r] * ratio
            q_lt = np.floor(p)
            q_rb = q_lt + 1.0
            q_lt_c = int(np.clip(q_lt, 0, size_pad - 1))
            q_rb_c = int(np.clip(q_rb, 0, size_pad - 1))
            pc = np.clip(p, 0, size_pad - 1)
            M[i * ks + r, q_lt_c] += 1.0 + (q_lt_c - pc)   # "lt" tap
            M[i * ks + r, q_rb_c] += 1.0 - (q_rb_c - pc)   # "rb" tap
    return M


def _reflect_matrix(length, pad):
    """(length + 2*pad, length) 0/1 selection matrix implementing
    ReflectionPad1d(pad) along one axis (padded index -> source index)."""
    P = np.zeros((length + 2 * pad, length), np.float64)
    for i in range(length + 2 * pad):
        if i < pad:
            src = pad - i
        elif i < pad + length:
            src = i - pad
        else:
            src = 2 * length + pad - i - 2
        P[i, src] = 1.0
    return P


# ----------------------------------------------------------------------------
# Pallas kernel: row combine (Rw @ X_tile) then fused block-diagonal column
# combine -> one lane-dense (Ho, tb*Wo) output tile per grid step.
# ----------------------------------------------------------------------------
def _deform_sample_kernel(x_ref, rw_ref, cbd_ref, o_ref):
    z = jnp.dot(rw_ref[...], x_ref[...],
                preferred_element_type=jnp.float32)           # (Ho, tb*W)
    o_ref[...] = jnp.dot(z, cbd_ref[...],
                         preferred_element_type=jnp.float32).astype(o_ref.dtype)


# ----------------------------------------------------------------------------
# Forward builder (cached per configuration; constants baked into the jit).
# ----------------------------------------------------------------------------
@functools.lru_cache(maxsize=None)
def _build_forward(b, c, h, w, ks, pad, stride, ratio, mod_scale):
    H, W = h, w
    Hp, Wp = h + 2 * pad, w + 2 * pad
    Ho, Wo = h * ks, w * ks
    BC = b * c

    # Fold reflection padding directly into the combine matrices so the kernel
    # consumes the *unpadded* image.
    Rw = (_axis_combine_matrix(h, Hp, ks, stride, ratio)
          @ _reflect_matrix(H, pad)).astype(np.float32)        # (Ho, H)
    Cw = (_axis_combine_matrix(w, Wp, ks, stride, ratio)
          @ _reflect_matrix(W, pad)).T.astype(np.float32)      # (W, Wo)

    cap = _vmem_capacity_bytes()

    def block_bytes(tb):
        return 4 * (H * tb * W            # x tile
                    + Ho * H              # Rw
                    + tb * W * tb * Wo    # block-diagonal Cw
                    + Ho * tb * W         # intermediate Z
                    + Ho * tb * Wo)       # output tile

    # Smallest image-group size with multiple-of-128 lane widths (needed only
    # when the grid has more than one step).
    granule = 128 // math.gcd(W, 128)
    small_budget = 4 << 20
    budget = min(cap // 6, 24 << 20)

    if block_bytes(BC) <= small_budget:
        # Whole problem in one step: blocks equal the full arrays, so there are
        # no alignment constraints and no per-step overhead.
        tb = BC
    else:
        tb = granule
        while (tb * 2 <= BC and _cdiv(BC, tb * 2) >= 2
               and block_bytes(tb * 2) <= budget):
            tb *= 2
        if block_bytes(tb) > budget:
            # TODO(synk): add an output-column grid axis for very large spatial
            # sizes instead of relying on a raised VMEM limit.
            tb = granule

    BCp = _round_up(BC, tb)
    grid = (BCp // tb,)

    # Block-diagonal column-combine matrix (one Cw block per image in the tile).
    Cbd = np.zeros((tb * W, tb * Wo), np.float32)
    for t in range(tb):
        Cbd[t * W:(t + 1) * W, t * Wo:(t + 1) * Wo] = Cw

    vmem_limit = int(min(max(4 * block_bytes(tb) + (2 << 20), 16 << 20),
                         max(cap * 3 // 4, 16 << 20)))

    cost = pl.CostEstimate(
        flops=int(grid[0] * (2 * Ho * H * tb * W + 2 * Ho * tb * W * tb * Wo)),
        transcendentals=0,
        bytes_accessed=int(4 * (H * BCp * W + Ho * H + tb * W * tb * Wo
                                + Ho * BCp * Wo)),
    )

    sample = pl.pallas_call(
        _deform_sample_kernel,
        out_shape=jax.ShapeDtypeStruct((Ho, BCp * Wo), jnp.float32),
        grid_spec=pltpu.PrefetchScalarGridSpec(
            num_scalar_prefetch=0,
            grid=grid,
            in_specs=[
                pl.BlockSpec((H, tb * W), lambda i: (0, i)),        # x tile
                pl.BlockSpec((Ho, H), lambda i: (0, 0)),            # Rw (const)
                pl.BlockSpec((tb * W, tb * Wo), lambda i: (0, 0)),  # blockdiag Cw
            ],
            out_specs=pl.BlockSpec((Ho, tb * Wo), lambda i: (0, i)),
        ),
        compiler_params=pltpu.CompilerParams(
            dimension_semantics=("parallel",),
            vmem_limit_bytes=vmem_limit,
        ),
        cost_estimate=cost,
    )

    # Modulation (m_conv weights are zero-init): sigmoid(bias) per kernel point,
    # applied as a constant (Ho, Wo) pattern outside the matmuls.
    pattern = None
    if mod_scale is not None:
        pattern = np.tile(np.asarray(mod_scale, np.float32).reshape(ks, ks), (h, w))

    Rw_j = jnp.asarray(Rw)
    Cbd_j = jnp.asarray(Cbd)
    pattern_j = jnp.asarray(pattern) if pattern is not None else None

    def forward(x):
        xf = x.astype(jnp.float32)
        # (b, c, H, W) -> (H, BC*W): image rows on sublanes, images*cols on lanes.
        x_t = jnp.transpose(xf, (2, 0, 1, 3)).reshape(H, BC * W)
        if BCp != BC:
            x_t = jnp.pad(x_t, ((0, 0), (0, (BCp - BC) * W)))
        out = sample(x_t, Rw_j, Cbd_j)                  # (Ho, BCp*Wo)
        out = out.reshape(Ho, BCp, Wo)[:, :BC]
        out = jnp.transpose(out, (1, 0, 2)).reshape(b, c, Ho, Wo)
        if pattern_j is not None:
            out = out * pattern_j
        return out

    return jax.jit(forward)


def deform_conv2d_forward(x, kernel_size=3, padding=1, stride=1, ratio=1,
                          modulation=False, m_bias=None):
    b, c, h, w = x.shape
    mod = None
    if modulation:
        sig = 1.0 / (1.0 + np.exp(-np.asarray(m_bias, np.float64)))
        mod = tuple(float(v) for v in sig.ravel())
    fwd = _build_forward(int(b), int(c), int(h), int(w), int(kernel_size),
                         int(padding), int(stride), float(ratio), mod)
    return fwd(x)


# ----------------------------------------------------------------------------
# Independent numpy reference (literal translation of the torch forward)
# ----------------------------------------------------------------------------
def _bilinear_constants(h, w, ks, pad, stride, ratio):
    N = ks * ks
    Hp, Wp = h + 2 * pad, w + 2 * pad
    rng = np.arange(-(ks - 1) // 2, (ks - 1) // 2 + 1)
    pnx, pny = np.meshgrid(rng, rng, indexing="ij")
    p_n = np.concatenate([pnx.flatten(), pny.flatten()]).astype(np.float64)
    p0x, p0y = np.meshgrid(np.arange(1, h * stride + 1, stride),
                           np.arange(1, w * stride + 1, stride), indexing="ij")
    p_0 = np.concatenate([np.repeat(p0x[None], N, 0),
                          np.repeat(p0y[None], N, 0)], axis=0).astype(np.float64)
    p_0 = p_0 - 1 + ks // 2
    p = p_0 + p_n[:, None, None] * ratio
    p = np.transpose(p, (1, 2, 0))

    def clampq(q):
        return np.concatenate([np.clip(q[..., :N], 0, Hp - 1),
                               np.clip(q[..., N:], 0, Wp - 1)], axis=-1)

    q_lt = clampq(np.floor(p)).astype(np.int64)
    q_rb = clampq(np.floor(p) + 1).astype(np.int64)
    q_lb = np.concatenate([q_lt[..., :N], q_rb[..., N:]], axis=-1)
    q_rt = np.concatenate([q_rb[..., :N], q_lt[..., N:]], axis=-1)
    pc = clampq(p)

    def g(q, sx, sy):
        return ((1.0 + sx * (q[..., :N] - pc[..., :N])) *
                (1.0 + sy * (q[..., N:] - pc[..., N:]))).astype(np.float32)

    corners = [(q_lt, g(q_lt, +1, +1)), (q_rb, g(q_rb, -1, -1)),
               (q_lb, g(q_lb, +1, -1)), (q_rt, g(q_rt, -1, +1))]
    return corners, N, Hp, Wp


def _reference_forward_np(x, ks, pad, stride, ratio):
    b, c, h, w = x.shape
    corners, N, Hp, Wp = _bilinear_constants(h, w, ks, pad, stride, ratio)
    xp = np.pad(x, ((0, 0), (0, 0), (pad, pad), (pad, pad)), mode="reflect")
    xf = xp.reshape(b, c, Hp * Wp)
    x_off = np.zeros((b, c, h, w, N), np.float32)
    for q, gw in corners:
        flat = q[..., :N] * Wp + q[..., N:]
        x_off += gw[None, None] * xf[:, :, flat]
    out = (x_off.reshape(b, c, h, w, ks, ks)
                 .transpose(0, 1, 2, 4, 3, 5)
                 .reshape(b, c, h * ks, w * ks))
    return out


if __name__ == "__main__":
    key = jax.random.PRNGKey(0)
    x = jax.random.normal(key, (2, 4, 16, 16), dtype=jnp.float32)

    # Default module configuration: kernel_size=3, padding=1, stride=1,
    # modulation=False, ratio=1.
    out = deform_conv2d_forward(x, kernel_size=3, padding=1, stride=1, ratio=1,
                                modulation=False)
    out = jax.block_until_ready(out)
    assert out.shape == (2, 4, 48, 48), out.shape
    ref = _reference_forward_np(np.asarray(x), ks=3, pad=1, stride=1, ratio=1)
    np.testing.assert_allclose(np.asarray(out), ref, rtol=1e-4, atol=1e-4)

    # Fractional-ratio configuration exercises the non-trivial bilinear weights.
    out2 = deform_conv2d_forward(x, kernel_size=3, padding=1, stride=1,
                                 ratio=0.5, modulation=False)
    out2 = jax.block_until_ready(out2)
    ref2 = _reference_forward_np(np.asarray(x), ks=3, pad=1, stride=1, ratio=0.5)
    np.testing.assert_allclose(np.asarray(out2), ref2, rtol=1e-4, atol=1e-4)

    print("KERNEL_OK")
</pallas_src>

<mosaic_0001>
module attributes {stable_mosaic.version = 11 : i64} {
  func.func @_deform_sample_kernel(%arg0: i32, %arg1: memref<16x128xf32, #tpu.memory_space<vmem>>, %arg2: memref<48x16xf32, #tpu.memory_space<vmem>>, %arg3: memref<128x384xf32, #tpu.memory_space<vmem>>, %arg4: memref<48x384xf32, #tpu.memory_space<vmem>>) attributes {dimension_semantics = [#tpu.dimension_semantics<parallel>], iteration_bounds = array<i64: 1>, scalar_prefetch = 0 : i64, scratch_operands = 0 : i64, tpu.core_type = #tpu.core_type<tc>, window_params = [{transform_indices = @transform_0, window_bounds = array<i64: 16, 128>}, {pipeline_mode = #tpu.pipeline_mode<synchronous>, transform_indices = @transform_1, window_bounds = array<i64: 48, 16>}, {pipeline_mode = #tpu.pipeline_mode<synchronous>, transform_indices = @transform_2, window_bounds = array<i64: 128, 384>}, {transform_indices = @transform_3, window_bounds = array<i64: 48, 384>}]} {
    %c0 = arith.constant 0 : index
    %c0_0 = arith.constant 0 : index
    %0 = vector.load %arg2[%c0, %c0_0] : memref<48x16xf32, #tpu.memory_space<vmem>>, vector<48x16xf32>
    %c0_1 = arith.constant 0 : index
    %c0_2 = arith.constant 0 : index
    %1 = vector.load %arg1[%c0_1, %c0_2] : memref<16x128xf32, #tpu.memory_space<vmem>>, vector<16x128xf32>
    %cst = arith.constant dense<0.000000e+00> : vector<48x128xf32>
    %2 = tpu.matmul %0, %1, %cst {dimension_numbers = #tpu.dot_dimension_numbers<[1], [0], [0], [1], [0, 0, 1, 1], [], []>} : vector<48x16xf32>, vector<16x128xf32>, vector<48x128xf32> -> vector<48x128xf32>
    %c0_3 = arith.constant 0 : index
    %c0_4 = arith.constant 0 : index
    %3 = vector.load %arg3[%c0_3, %c0_4] : memref<128x384xf32, #tpu.memory_space<vmem>>, vector<128x384xf32>
    %cst_5 = arith.constant dense<0.000000e+00> : vector<48x384xf32>
    %4 = tpu.matmul %2, %3, %cst_5 {dimension_numbers = #tpu.dot_dimension_numbers<[1], [0], [0], [1], [0, 0, 1, 1], [], []>} : vector<48x128xf32>, vector<128x384xf32>, vector<48x384xf32> -> vector<48x384xf32>
    %c0_6 = arith.constant 0 : index
    %c0_7 = arith.constant 0 : index
    %5 = vector.load %arg4[%c0_6, %c0_7] : memref<48x384xf32, #tpu.memory_space<vmem>>, vector<48x384xf32>
    tpu.vector_store %arg4[%c0_6, %c0_7], %4 {strides = array<i32>} : memref<48x384xf32, #tpu.memory_space<vmem>>, vector<48x384xf32>,
    return
  }
  func.func @transform_0(%arg0: i32) -> (i32, i32) {
    %c0_i32 = arith.constant 0 : i32
    %c0_i32_0 = arith.constant 0 : i32
    return %c0_i32, %arg0 : i32, i32
  }
  func.func @transform_1(%arg0: i32) -> (i32, i32) {
    %c0_i32 = arith.constant 0 : i32
    %c0_i32_0 = arith.constant 0 : i32
    %c0_i32_1 = arith.constant 0 : i32
    return %c0_i32, %c0_i32_0 : i32, i32
  }
  func.func @transform_2(%arg0: i32) -> (i32, i32) {
    %c0_i32 = arith.constant 0 : i32
    %c0_i32_0 = arith.constant 0 : i32
    %c0_i32_1 = arith.constant 0 : i32
    return %c0_i32, %c0_i32_0 : i32, i32
  }
  func.func @transform_3(%arg0: i32) -> (i32, i32) {
    %c0_i32 = arith.constant 0 : i32
    %c0_i32_0 = arith.constant 0 : i32
    return %c0_i32, %arg0 : i32, i32
  }
}

</mosaic_0001>

<bundles_post_ra>
// kernel: forward.1
= control target key start
LH: loop header
LB: loop body
LE: loop exit
PB: predicated region body
PF: predicated region fallthrough
CT: control target
= control target key end

     0   :  { %8 = vsyncpa [#allocation3], 0  ;;  %s303_s15 = smov [#allocation2]   ;;  %s304_s17 = smov 128   ;;  %s539_s0 = inlined_call_operand.vmem [shape: f32[16,128], index: 0, kind: input, shape index: {}]   ;;  %s540_s1 = inlined_call_operand.hbm [shape: f32[48,16], index: 1, kind: input, shape index: {}]   ;;  %s541_s2 = inlined_call_operand.vmem [shape: f32[128,384], index: 2, kind: input, shape index: {}]   ;;  %s542_s3 = inlined_call_operand.vmem [shape: f32[48,384], index: 3, kind: output, shape index: {}]  }
   0x1   :  { %s15_s14 = sshll.u32 %s540_s1, 4  ;;  %s17_s16 = sshll.u32 %s303_s15, 4  ;;  %s16_s14 = int_to_ptr.hbm [resolvable:$true] %s15_s14  ;;  %s18_s16 = int_to_ptr.vmem [resolvable:$true] %s17_s16 }
   0x2   :  { %s305_s18 = smov 8  }
   0x3   :  { %23 = dma.hbm_to_vmem [thread:$0]  %s16_s14, 768, %s18_s16, [#allocation3], %s304_s17, %s304_s17, %s305_s18  }
   0x4   :  { %301 = dma.done.wait [#allocation3], 768  }
   0x5   :  { %302 = vsyncadd [#allocation3], 4294966528  ;;  %v37_v0 = vld [vmem:[%s539_s0 + $0x8] sm:$0xff]  ;;  %v36_v1 = vld [vmem:[%s539_s0] sm:$0xff]  ;;  %vm38_vm0 = vcmask 130048  }
   0x6   :  { %71 = vmatpush.msra.mxu0 %v37_v0  ;;  %v30_v2 = vld [vmem:[#allocation2] sm:$0xff]  ;;  %v31_v3 = vld [vmem:[#allocation2 + $0x8] sm:$0xff]  ;;  %v138_v5 = vld [vmem:[%s541_s2 + $0x170] sm:$0xff] }
   0x7   :  { %v137_v4 = vld [vmem:[%s541_s2 + $0x168] sm:$0xff]  ;;  %v139_v6 = vld [vmem:[%s541_s2 + $0x178] sm:$0xff]  ;;  %175 = vmatpush.msra.mxu2 %v138_v5  ;;  %v134_v7 = vld [vmem:[%s541_s2 + $0x150] sm:$0xff] }
   0x8   :  { %72 = vmatpush.msra.mxu0 %v36_v1  ;;  %140 = vmatpush.msra.mxu1 %v137_v4  ;;  %v135_v8 = vld [vmem:[%s541_s2 + $0x158] sm:$0xff]  ;;  %v136_v9 = vld [vmem:[%s541_s2 + $0x160] sm:$0xff]  ;;  %v133_v12 = vld [vmem:[%s541_s2 + $0x148] sm:$0xff] }
   0x9   :  { %268 = vmatmul.msk.f32.vlgmr.msra.gmra.mxu0 %vm38_vm0, %v30_v2  ;;  %210 = vmatpush.msra.mxu3 %v139_v6  ;;  %v131_v10 = vld [vmem:[%s541_s2 + $0x138] sm:$0xff]  ;;  %v132_v11 = vld [vmem:[%s541_s2 + $0x140] sm:$0xff]  ;;  %v129_v14 = vld [vmem:[%s541_s2 + $0x128] sm:$0xff] }
   0xa   :  { %141 = vmatpush.msra.mxu1 %v134_v7  ;;  %176 = vmatpush.msra.mxu2 %v135_v8  ;;  %v128_v13 = vld [vmem:[%s541_s2 + $0x120] sm:$0xff]  ;;  %v32_v15 = vld [vmem:[#allocation2 + $0x10] sm:$0xff]  ;;  %v125_v17 = vld [vmem:[%s541_s2 + $0x108] sm:$0xff] }
   0xb   :  { %211 = vmatpush.msra.mxu3 %v136_v9  ;;  %v130_v16 = vld [vmem:[%s541_s2 + $0x130] sm:$0xff]  ;;  %v127_v19 = vld [vmem:[%s541_s2 + $0x118] sm:$0xff]  ;;  %v124_v22 = vld [vmem:[%s541_s2 + $0x100] sm:$0xff] }
   0xc   :  { %142 = vmatpush.msra.mxu1 %v131_v10  ;;  %177 = vmatpush.msra.mxu2 %v132_v11  ;;  %v126_v18 = vld [vmem:[%s541_s2 + $0x110] sm:$0xff]  ;;  %v123_v21 = vld [vmem:[%s541_s2 + $0xf8] sm:$0xff]  ;;  %v120_v24 = vld [vmem:[%s541_s2 + $0xe0] sm:$0xff] }
   0xd   :  { %212 = vmatpush.msra.mxu3 %v133_v12  ;;  %v122_v20 = vld [vmem:[%s541_s2 + $0xf0] sm:$0xff]  ;;  %v119_v23 = vld [vmem:[%s541_s2 + $0xd8] sm:$0xff]  ;;  %v121_v25 = vld [vmem:[%s541_s2 + $0xe8] sm:$0xff] }
   0xe   :  { %143 = vmatpush.msra.mxu1 %v128_v13  ;;  %178 = vmatpush.msra.mxu2 %v129_v14  ;;  %v116_v26 = vld [vmem:[%s541_s2 + $0xc0] sm:$0xff]  ;;  %v117_v27 = vld [vmem:[%s541_s2 + $0xc8] sm:$0xff]  ;;  %v33_v28 = vld [vmem:[#allocation2 + $0x18] sm:$0xff] }
   0xf   :  { %213 = vmatpush.msra.mxu3 %v130_v16  ;;  %v118_v29 = vld [vmem:[%s541_s2 + $0xd0] sm:$0xff]  ;;  %v113_v30 = vld [vmem:[%s541_s2 + $0xa8] sm:$0xff]  ;;  %v115_v32 = vld [vmem:[%s541_s2 + $0xb8] sm:$0xff] }
  0x10   :  { %144 = vmatpush.msra.mxu1 %v125_v17  ;;  %179 = vmatpush.msra.mxu2 %v126_v18  ;;  %v114_v31 = vld [vmem:[%s541_s2 + $0xb0] sm:$0xff]  ;;  %v111_v34 = vld [vmem:[%s541_s2 + $0x98] sm:$0xff]  ;;  %v112_v35 = vld [vmem:[%s541_s2 + $0xa0] sm:$0xff] }
  0x11   :  { %269 = vmatmul.msk.f32.gmra.mxu0 %vm38_vm0, %v31_v3  ;;  %214 = vmatpush.msra.mxu3 %v127_v19  ;;  %v110_v33 = vld [vmem:[%s541_s2 + $0x90] sm:$0xff]  ;;  %v107_v36 = vld [vmem:[%s541_s2 + $0x78] sm:$0xff]  ;;  %v108_v37 = vld [vmem:[%s541_s2 + $0x80] sm:$0xff] }
  0x12   :  { %145 = vmatpush.msra.mxu1 %v122_v20  ;;  %180 = vmatpush.msra.mxu2 %v123_v21  ;;  %v109_v38 = vld [vmem:[%s541_s2 + $0x88] sm:$0xff]  ;;  %v104_v39 = vld [vmem:[%s541_s2 + $0x60] sm:$0xff]  ;;  %v106_v42 = vld [vmem:[%s541_s2 + $0x70] sm:$0xff] }
  0x13   :  { %215 = vmatpush.msra.mxu3 %v124_v22  ;;  %v105_v40 = vld [vmem:[%s541_s2 + $0x68] sm:$0xff]  ;;  %v34_v41 = vld [vmem:[#allocation2 + $0x20] sm:$0xff]  ;;  %v102_v44 = vld [vmem:[%s541_s2 + $0x50] sm:$0xff] }
  0x14   :  { %146 = vmatpush.msra.mxu1 %v119_v23  ;;  %181 = vmatpush.msra.mxu2 %v120_v24  ;;  %v101_v43 = vld [vmem:[%s541_s2 + $0x48] sm:$0xff]  ;;  %v103_v45 = vld [vmem:[%s541_s2 + $0x58] sm:$0xff]  ;;  %v98_v46 = vld [vmem:[%s541_s2 + $0x30] sm:$0xff] }
  0x15   :  { %216 = vmatpush.msra.mxu3 %v121_v25  ;;  %v99_v47 = vld [vmem:[%s541_s2 + $0x38] sm:$0xff]  ;;  %v100_v48 = vld [vmem:[%s541_s2 + $0x40] sm:$0xff]  ;;  %v97_v51 = vld [vmem:[%s541_s2 + $0x28] sm:$0xff] }
  0x16   :  { %147 = vmatpush.msra.mxu1 %v116_v26  ;;  %182 = vmatpush.msra.mxu2 %v117_v27  ;;  %v95_v49 = vld [vmem:[%s541_s2 + $0x18] sm:$0xff]  ;;  %v96_v50 = vld [vmem:[%s541_s2 + $0x20] sm:$0xff]  ;;  %v35_v52 = vld [vmem:[#allocation2 + $0x28] sm:$0xff] }
  0x17   :  { %217 = vmatpush.msra.mxu3 %v118_v29  ;;  %v92_v53 = vld [vmem:[%s541_s2] sm:$0xff]  ;;  %v93_v54 = vld [vmem:[%s541_s2 + $0x8] sm:$0xff]  ;;  %v94_v55 = vld [vmem:[%s541_s2 + $0x10] sm:$0xff] }
  0x18   :  { %148 = vmatpush.msra.mxu1 %v113_v30  ;;  %183 = vmatpush.msra.mxu2 %v114_v31 }
  0x19   :  { %270 = vmatmul.msk.f32.gmra.mxu0 %vm38_vm0, %v32_v15  ;;  %218 = vmatpush.msra.mxu3 %v115_v32 }
  0x1a   :  { %149 = vmatpush.msra.mxu1 %v110_v33  ;;  %184 = vmatpush.msra.mxu2 %v111_v34 }
  0x1b   :  { %219 = vmatpush.msra.mxu3 %v112_v35 }
  0x1c   :  { %150 = vmatpush.msra.mxu1 %v107_v36  ;;  %185 = vmatpush.msra.mxu2 %v108_v37 }
  0x1d   :  { %220 = vmatpush.msra.mxu3 %v109_v38 }
  0x1e   :  { %151 = vmatpush.msra.mxu1 %v104_v39  ;;  %186 = vmatpush.msra.mxu2 %v105_v40 }
  0x1f   :  { %221 = vmatpush.msra.mxu3 %v106_v42 }
  0x20   :  { %152 = vmatpush.msra.mxu1 %v101_v43  ;;  %187 = vmatpush.msra.mxu2 %v102_v44 }
  0x21   :  { %271 = vmatmul.msk.f32.gmra.mxu0 %vm38_vm0, %v33_v28  ;;  %222 = vmatpush.msra.mxu3 %v103_v45 }
  0x22   :  { %153 = vmatpush.msra.mxu1 %v98_v46  ;;  %188 = vmatpush.msra.mxu2 %v99_v47 }
  0x23   :  { %223 = vmatpush.msra.mxu3 %v100_v48 }
  0x24   :  { %154 = vmatpush.msra.mxu1 %v95_v49  ;;  %189 = vmatpush.msra.mxu2 %v96_v50 }
  0x25   :  { %224 = vmatpush.msra.mxu3 %v97_v51 }
  0x26   :  { %155 = vmatpush.msra.mxu1 %v92_v53  ;;  %190 = vmatpush.msra.mxu2 %v93_v54 }
  0x27   :  { %225 = vmatpush.msra.mxu3 %v94_v55 }
  0x29   :  { %272 = vmatmul.msk.f32.gmra.mxu0 %vm38_vm0, %v34_v41 }
  0x31   :  { %273 = vmatmul.msk.f32.gmra.mxu0 %vm38_vm0, %v35_v52 }
  0x86   :  { %v74_v56 = vpop.f32.mrf.mxu0 }
  0x87   :  { %156 = vmatmul.f32.vlgmr.msra.gmra.mxu1 %v74_v56  ;;  %191 = vmatmul.f32.vlgmr.msra.gmra.mxu2 %v74_v56 }
  0x88   :  { %226 = vmatmul.f32.vlgmr.msra.gmra.mxu3 %v74_v56 }
  0x8e   :  { %v77_v57 = vpop.f32.mrf.mxu0 }
  0x8f   :  { %159 = vmatmul.f32.gmra.mxu1 %v77_v57  ;;  %194 = vmatmul.f32.gmra.mxu2 %v77_v57 }
  0x90   :  { %229 = vmatmul.f32.gmra.mxu3 %v77_v57 }
  0x96   :  { %v80_v58 = vpop.f32.mrf.mxu0 }
  0x97   :  { %162 = vmatmul.f32.gmra.mxu1 %v80_v58  ;;  %197 = vmatmul.f32.gmra.mxu2 %v80_v58 }
  0x98   :  { %232 = vmatmul.f32.gmra.mxu3 %v80_v58 }
  0x9e   :  { %v83_v59 = vpop.f32.mrf.mxu0 }
  0x9f   :  { %165 = vmatmul.f32.gmra.mxu1 %v83_v59  ;;  %200 = vmatmul.f32.gmra.mxu2 %v83_v59 }
  0xa0   :  { %235 = vmatmul.f32.gmra.mxu3 %v83_v59 }
  0xa6   :  { %v86_v60 = vpop.f32.mrf.mxu0 }
  0xa7   :  { %168 = vmatmul.f32.gmra.mxu1 %v86_v60  ;;  %203 = vmatmul.f32.gmra.mxu2 %v86_v60 }
  0xa8   :  { %238 = vmatmul.f32.gmra.mxu3 %v86_v60 }
  0xae   :  { %v89_v61 = vpop.f32.mrf.mxu0 }
  0xaf   :  { %171 = vmatmul.f32.gmra.mxu1 %v89_v61  ;;  %206 = vmatmul.f32.gmra.mxu2 %v89_v61 }
  0xb0   :  { %241 = vmatmul.f32.gmra.mxu3 %v89_v61 }
 0x104   :  { %v157_v62 = vpop.f32.mrf.mxu1 }
 0x105   :  { %245 = vst [vmem:[%s542_s3] sm:$0xff] %v157_v62 }
 0x10a   :  { %v192_v63 = vpop.f32.mrf.mxu2 }
 0x10b   :  { %246 = vst [vmem:[%s542_s3 + $0x8] sm:$0xff] %v192_v63  ;;  %v227_v0 = vpop.f32.mrf.mxu3 }
 0x10c   :  { %247 = vst [vmem:[%s542_s3 + $0x10] sm:$0xff] %v227_v0  ;;  %v160_v1 = vpop.f32.mrf.mxu1 }
 0x10d   :  { %248 = vst [vmem:[%s542_s3 + $0x18] sm:$0xff] %v160_v1 }
 0x112   :  { %v195_v2 = vpop.f32.mrf.mxu2 }
 0x113   :  { %249 = vst [vmem:[%s542_s3 + $0x20] sm:$0xff] %v195_v2  ;;  %v230_v3 = vpop.f32.mrf.mxu3 }
 0x114   :  { %250 = vst [vmem:[%s542_s3 + $0x28] sm:$0xff] %v230_v3  ;;  %v163_v4 = vpop.f32.mrf.mxu1 }
 0x115   :  { %251 = vst [vmem:[%s542_s3 + $0x30] sm:$0xff] %v163_v4 }
 0x11a   :  { %v198_v5 = vpop.f32.mrf.mxu2 }
 0x11b   :  { %252 = vst [vmem:[%s542_s3 + $0x38] sm:$0xff] %v198_v5  ;;  %v233_v6 = vpop.f32.mrf.mxu3 }
 0x11c   :  { %253 = vst [vmem:[%s542_s3 + $0x40] sm:$0xff] %v233_v6  ;;  %v166_v7 = vpop.f32.mrf.mxu1 }
 0x11d   :  { %254 = vst [vmem:[%s542_s3 + $0x48] sm:$0xff] %v166_v7 }
 0x122   :  { %v201_v8 = vpop.f32.mrf.mxu2 }
 0x123   :  { %255 = vst [vmem:[%s542_s3 + $0x50] sm:$0xff] %v201_v8  ;;  %v236_v9 = vpop.f32.mrf.mxu3 }
 0x124   :  { %256 = vst [vmem:[%s542_s3 + $0x58] sm:$0xff] %v236_v9  ;;  %v169_v10 = vpop.f32.mrf.mxu1 }
 0x125   :  { %257 = vst [vmem:[%s542_s3 + $0x60] sm:$0xff] %v169_v10 }
 0x12a   :  { %v204_v11 = vpop.f32.mrf.mxu2 }
 0x12b   :  { %258 = vst [vmem:[%s542_s3 + $0x68] sm:$0xff] %v204_v11  ;;  %v239_v12 = vpop.f32.mrf.mxu3 }
 0x12c   :  { %259 = vst [vmem:[%s542_s3 + $0x70] sm:$0xff] %v239_v12  ;;  %v172_v13 = vpop.f32.mrf.mxu1 }
 0x12d   :  { %260 = vst [vmem:[%s542_s3 + $0x78] sm:$0xff] %v172_v13 }
 0x132   :  { %v207_v14 = vpop.f32.mrf.mxu2 }
 0x133   :  { %261 = vst [vmem:[%s542_s3 + $0x80] sm:$0xff] %v207_v14  ;;  %v242_v15 = vpop.f32.mrf.mxu3 }
 0x134   :  { %262 = vst [vmem:[%s542_s3 + $0x88] sm:$0xff] %v242_v15 }
 0x135   :  { %267 = vsyncpa [#allocation3], 1 }

</bundles_post_ra>
